<compile_context>
chip_gen: v6e
topology: v6e:2x2x1
jax: 0.10.0
libtpu: 0.0.40
codegen_flags: <defaults>
</compile_context>

<pallas_src>
import jax
import jax.numpy as jnp
from jax.experimental import pallas as pl
from jax.experimental.pallas import tpu as pltpu


_TAPS = tuple((dh, dw) for dh in (-1, 0, 1) for dw in (-1, 0, 1))


def _make_basic_block_kernel(H, W):
    HW = H * W

    def kernel(x_ref, mask_ref, w1_ref, w2_ref, ws_ref,
               b1_ref, b2_ref, bs_ref, o_ref):
        # x_ref:    (1, Cin_p, HW) f32   one batch element, channels x spatial
        # mask_ref: (9, 1, HW)     f32   0/1 validity mask per conv tap
        # w1_ref:   (C, 9*Cin_p)   bf16  conv1 weights (BN1 scale folded in)
        # w2_ref:   (C, 9*C)       bf16  conv2 weights (BN2 scale folded in)
        # ws_ref:   (C, Cin_p)     bf16  1x1 shortcut weights (BN scale folded)
        # b*_ref:   (C, 1)         f32   folded BatchNorm biases
        # o_ref:    (1, C, HW)     f32
        x = x_ref[0]                                         # (Cin_p, HW) f32
        masks = [mask_ref[k] for k in range(9)]              # each (1, HW) f32

        def im2col(v):
            # v: (Cv, HW) f32 -> (9*Cv, HW) bf16, tap-major along K.
            pieces = []
            for k, (dh, dw) in enumerate(_TAPS):
                d = dh * W + dw                              # flattened offset
                shifted = v if d == 0 else pltpu.roll(v, shift=(-d) % HW, axis=1)
                pieces.append(shifted * masks[k])            # zero OOB taps
            return jnp.concatenate(pieces, axis=0).astype(jnp.bfloat16)

        # ---- conv1 (3x3, pad 1) + bn1 + relu : single MXU matmul, K=9*Cin_p
        out1 = jnp.dot(w1_ref[...], im2col(x),
                       preferred_element_type=jnp.float32) + b1_ref[...]
        out1 = jnp.maximum(out1, 0.0)                        # (C, HW) f32

        # ---- conv2 (3x3, pad 1) + bn2      : single MXU matmul, K=9*C
        out2 = jnp.dot(w2_ref[...], im2col(out1),
                       preferred_element_type=jnp.float32) + b2_ref[...]

        # ---- shortcut: 1x1 conv + bn
        sc = jnp.dot(ws_ref[...], x.astype(jnp.bfloat16),
                     preferred_element_type=jnp.float32) + bs_ref[...]

        # ---- residual add + relu (store is lane-dense: HW on the lane axis)
        o_ref[0] = jnp.maximum(out2 + sc, 0.0).astype(o_ref.dtype)

    return kernel


def basic_block_pallas(x_nchw, params, stride=1):
    # TODO(synk): stride>1 (spatial downsampling) path not implemented in-kernel.
    assert stride == 1, "only stride=1 supported"
    N, Cin, H, W = x_nchw.shape
    HW = H * W
    C = params["bn1_scale"].shape[-1]
    assert C % 8 == 0, "planes must be a multiple of 8 (sublane alignment)"

    # Pad Cin up to a multiple of 8 so the in-kernel K-axis concat is
    # sublane-aligned (free reshape + tiny channel pad, no spatial pad).
    Cin_p = -(-Cin // 8) * 8
    x = x_nchw.reshape(N, Cin, HW).astype(jnp.float32)
    if Cin_p != Cin:
        x = jnp.pad(x, ((0, 0), (0, Cin_p - Cin), (0, 0)))

    # Per-tap 0/1 validity masks over flattened spatial positions.
    rows = jnp.arange(H).reshape(H, 1)
    cols = jnp.arange(W).reshape(1, W)
    tap_masks = []
    for dh, dw in _TAPS:
        valid = ((rows + dh >= 0) & (rows + dh < H) &
                 (cols + dw >= 0) & (cols + dw < W))
        tap_masks.append(valid.reshape(1, HW))
    tap_mask = jnp.stack(tap_masks, axis=0).astype(jnp.float32)   # (9, 1, HW)

    # Fold BN scales into conv weights; biases stay separate.
    def prep3x3(w_hwio, scale, ci_pad):
        w = w_hwio * scale                                   # fold scale on Cout
        ci = w.shape[2]
        if ci_pad != ci:
            w = jnp.pad(w, ((0, 0), (0, 0), (0, ci_pad - ci), (0, 0)))
        return jnp.transpose(w, (3, 0, 1, 2)).reshape(C, 9 * ci_pad).astype(jnp.bfloat16)

    w1 = prep3x3(params["w1_hwio"], params["bn1_scale"], Cin_p)   # (C, 9*Cin_p)
    w2 = prep3x3(params["w2_hwio"], params["bn2_scale"], C)       # (C, 9*C)
    ws = params["ws_hwio"][0, 0] * params["bns_scale"]            # (Cin, C)
    if Cin_p != Cin:
        ws = jnp.pad(ws, ((0, Cin_p - Cin), (0, 0)))
    ws = ws.T.astype(jnp.bfloat16)                                # (C, Cin_p)

    b1 = params["bn1_bias"].reshape(C, 1).astype(jnp.float32)
    b2 = params["bn2_bias"].reshape(C, 1).astype(jnp.float32)
    bs = params["bns_bias"].reshape(C, 1).astype(jnp.float32)

    def const_spec(shape):
        return pl.BlockSpec(shape, lambda n: (0,) * len(shape))

    flops = 2 * N * HW * C * (9 * Cin_p + 9 * C + Cin_p)
    bytes_accessed = (x.size * 4 + tap_mask.size * 4 + w1.size * 2 +
                      w2.size * 2 + ws.size * 2 + 3 * C * 4 + N * C * HW * 4)
    cost = pl.CostEstimate(flops=flops, transcendentals=0,
                           bytes_accessed=bytes_accessed)

    out = pl.pallas_call(
        _make_basic_block_kernel(H, W),
        out_shape=jax.ShapeDtypeStruct((N, C, HW), jnp.float32),
        grid=(N,),
        in_specs=[
            pl.BlockSpec((1, Cin_p, HW), lambda n: (n, 0, 0)),
            const_spec((9, 1, HW)),
            const_spec((C, 9 * Cin_p)),
            const_spec((C, 9 * C)),
            const_spec((C, Cin_p)),
            const_spec((C, 1)), const_spec((C, 1)), const_spec((C, 1)),
        ],
        out_specs=pl.BlockSpec((1, C, HW), lambda n: (n, 0, 0)),
        compiler_params=pltpu.CompilerParams(
            dimension_semantics=("parallel",)),
        cost_estimate=cost,
    )(x, tap_mask, w1, w2, ws, b1, b2, bs)

    return out.reshape(N, C, H, W)    # free metadata reshape back to NCHW


def init_params(key, in_planes, planes):
    ks = jax.random.split(key, 6)
    w1 = jax.random.normal(ks[0], (3, 3, in_planes, planes), jnp.float32) * 0.1
    w2 = jax.random.normal(ks[1], (3, 3, planes, planes), jnp.float32) * 0.1
    ws = jax.random.normal(ks[2], (1, 1, in_planes, planes), jnp.float32) * 0.1

    def bn(k):
        k1, k2, k3, k4 = jax.random.split(k, 4)
        gamma = jax.random.uniform(k1, (planes,), jnp.float32, 0.5, 1.5)
        beta = jax.random.normal(k2, (planes,), jnp.float32) * 0.1
        mean = jax.random.normal(k3, (planes,), jnp.float32) * 0.1
        var = jax.random.uniform(k4, (planes,), jnp.float32, 0.5, 1.5)
        eps = 1e-5
        scale = gamma / jnp.sqrt(var + eps)
        bias = beta - mean * scale
        return scale, bias

    s1, b1 = bn(ks[3])
    s2, b2 = bn(ks[4])
    ss, bs = bn(ks[5])
    return dict(w1_hwio=w1, w2_hwio=w2, ws_hwio=ws,
                bn1_scale=s1, bn1_bias=b1,
                bn2_scale=s2, bn2_bias=b2,
                bns_scale=ss, bns_bias=bs)


def basic_block_ref(x_nchw, p):
    # Pure-JAX f32 reference (same eval-mode BN folding) for correctness.
    x = jnp.transpose(x_nchw, (0, 2, 3, 1)).astype(jnp.float32)

    def conv(v, w):
        return jax.lax.conv_general_dilated(
            v, w, (1, 1), "SAME",
            dimension_numbers=("NHWC", "HWIO", "NHWC"),
            precision=jax.lax.Precision.HIGHEST)

    o = conv(x, p["w1_hwio"]) * p["bn1_scale"] + p["bn1_bias"]
    o = jnp.maximum(o, 0.0)
    o = conv(o, p["w2_hwio"]) * p["bn2_scale"] + p["bn2_bias"]
    sc = conv(x, p["ws_hwio"]) * p["bns_scale"] + p["bns_bias"]
    return jnp.transpose(jnp.maximum(o + sc, 0.0), (0, 3, 1, 2))


if __name__ == "__main__":
    key = jax.random.PRNGKey(0)
    kx, kp = jax.random.split(key)
    in_planes, planes = 4, 8
    N, H, W = 2, 16, 16

    x = jax.random.normal(kx, (N, in_planes, H, W), jnp.float32)  # NCHW input
    params = init_params(kp, in_planes, planes)

    out = jax.block_until_ready(basic_block_pallas(x, params))
    ref = jax.block_until_ready(basic_block_ref(x, params))

    assert out.shape == (N, planes, H, W), out.shape
    # bf16 MXU inputs (f32 accumulation) vs f32-HIGHEST reference -> loose tol.
    err = float(jnp.max(jnp.abs(out - ref)))
    assert err < 5e-2, f"max abs error {err}"
    print("KERNEL_OK")
</pallas_src>

<mosaic_0001>
module attributes {stable_mosaic.version = 11 : i64} {
  func.func @kernel(%arg0: i32, %arg1: memref<1x8x256xf32, #tpu.memory_space<vmem>>, %arg2: memref<9x1x256xf32, #tpu.memory_space<vmem>>, %arg3: memref<8x72xbf16, #tpu.memory_space<vmem>>, %arg4: memref<8x72xbf16, #tpu.memory_space<vmem>>, %arg5: memref<8x8xbf16, #tpu.memory_space<vmem>>, %arg6: memref<8x1xf32, #tpu.memory_space<vmem>>, %arg7: memref<8x1xf32, #tpu.memory_space<vmem>>, %arg8: memref<8x1xf32, #tpu.memory_space<vmem>>, %arg9: memref<1x8x256xf32, #tpu.memory_space<vmem>>) attributes {dimension_semantics = [#tpu.dimension_semantics<parallel>], iteration_bounds = array<i64: 2>, scalar_prefetch = 0 : i64, scratch_operands = 0 : i64, tpu.core_type = #tpu.core_type<tc>, window_params = [{transform_indices = @transform_0, window_bounds = array<i64: 1, 8, 256>}, {pipeline_mode = #tpu.pipeline_mode<synchronous>, transform_indices = @transform_1, window_bounds = array<i64: 9, 1, 256>}, {pipeline_mode = #tpu.pipeline_mode<synchronous>, transform_indices = @transform_2, window_bounds = array<i64: 8, 72>}, {pipeline_mode = #tpu.pipeline_mode<synchronous>, transform_indices = @transform_3, window_bounds = array<i64: 8, 72>}, {pipeline_mode = #tpu.pipeline_mode<synchronous>, transform_indices = @transform_4, window_bounds = array<i64: 8, 8>}, {pipeline_mode = #tpu.pipeline_mode<synchronous>, transform_indices = @transform_5, window_bounds = array<i64: 8, 1>}, {pipeline_mode = #tpu.pipeline_mode<synchronous>, transform_indices = @transform_6, window_bounds = array<i64: 8, 1>}, {pipeline_mode = #tpu.pipeline_mode<synchronous>, transform_indices = @transform_7, window_bounds = array<i64: 8, 1>}, {transform_indices = @transform_8, window_bounds = array<i64: 1, 8, 256>}]} {
    %c0 = arith.constant 0 : index
    %c0_0 = arith.constant 0 : index
    %c0_1 = arith.constant 0 : index
    %0 = vector.load %arg1[%c0, %c0_0, %c0_1] : memref<1x8x256xf32, #tpu.memory_space<vmem>>, vector<1x8x256xf32>
    %1 = vector.shape_cast %0 : vector<1x8x256xf32> to vector<8x256xf32>
    %c0_2 = arith.constant 0 : index
    %c0_3 = arith.constant 0 : index
    %c0_4 = arith.constant 0 : index
    %2 = vector.load %arg2[%c0_2, %c0_3, %c0_4] : memref<9x1x256xf32, #tpu.memory_space<vmem>>, vector<1x1x256xf32>
    %3 = vector.shape_cast %2 : vector<1x1x256xf32> to vector<1x256xf32>
    %c1 = arith.constant 1 : index
    %c0_5 = arith.constant 0 : index
    %c0_6 = arith.constant 0 : index
    %4 = vector.load %arg2[%c1, %c0_5, %c0_6] : memref<9x1x256xf32, #tpu.memory_space<vmem>>, vector<1x1x256xf32>
    %5 = vector.shape_cast %4 : vector<1x1x256xf32> to vector<1x256xf32>
    %c2 = arith.constant 2 : index
    %c0_7 = arith.constant 0 : index
    %c0_8 = arith.constant 0 : index
    %6 = vector.load %arg2[%c2, %c0_7, %c0_8] : memref<9x1x256xf32, #tpu.memory_space<vmem>>, vector<1x1x256xf32>
    %7 = vector.shape_cast %6 : vector<1x1x256xf32> to vector<1x256xf32>
    %c3 = arith.constant 3 : index
    %c0_9 = arith.constant 0 : index
    %c0_10 = arith.constant 0 : index
    %8 = vector.load %arg2[%c3, %c0_9, %c0_10] : memref<9x1x256xf32, #tpu.memory_space<vmem>>, vector<1x1x256xf32>
    %9 = vector.shape_cast %8 : vector<1x1x256xf32> to vector<1x256xf32>
    %c4 = arith.constant 4 : index
    %c0_11 = arith.constant 0 : index
    %c0_12 = arith.constant 0 : index
    %10 = vector.load %arg2[%c4, %c0_11, %c0_12] : memref<9x1x256xf32, #tpu.memory_space<vmem>>, vector<1x1x256xf32>
    %11 = vector.shape_cast %10 : vector<1x1x256xf32> to vector<1x256xf32>
    %c5 = arith.constant 5 : index
    %c0_13 = arith.constant 0 : index
    %c0_14 = arith.constant 0 : index
    %12 = vector.load %arg2[%c5, %c0_13, %c0_14] : memref<9x1x256xf32, #tpu.memory_space<vmem>>, vector<1x1x256xf32>
    %13 = vector.shape_cast %12 : vector<1x1x256xf32> to vector<1x256xf32>
    %c6 = arith.constant 6 : index
    %c0_15 = arith.constant 0 : index
    %c0_16 = arith.constant 0 : index
    %14 = vector.load %arg2[%c6, %c0_15, %c0_16] : memref<9x1x256xf32, #tpu.memory_space<vmem>>, vector<1x1x256xf32>
    %15 = vector.shape_cast %14 : vector<1x1x256xf32> to vector<1x256xf32>
    %c7 = arith.constant 7 : index
    %c0_17 = arith.constant 0 : index
    %c0_18 = arith.constant 0 : index
    %16 = vector.load %arg2[%c7, %c0_17, %c0_18] : memref<9x1x256xf32, #tpu.memory_space<vmem>>, vector<1x1x256xf32>
    %17 = vector.shape_cast %16 : vector<1x1x256xf32> to vector<1x256xf32>
    %c8 = arith.constant 8 : index
    %c0_19 = arith.constant 0 : index
    %c0_20 = arith.constant 0 : index
    %18 = vector.load %arg2[%c8, %c0_19, %c0_20] : memref<9x1x256xf32, #tpu.memory_space<vmem>>, vector<1x1x256xf32>
    %19 = vector.shape_cast %18 : vector<1x1x256xf32> to vector<1x256xf32>
    %c0_21 = arith.constant 0 : index
    %c0_22 = arith.constant 0 : index
    %20 = vector.load %arg3[%c0_21, %c0_22] : memref<8x72xbf16, #tpu.memory_space<vmem>>, vector<8x72xbf16>
    %c17_i32 = arith.constant 17 : i32
    %21 = tpu.dynamic_rotate %1 by %c17_i32 dim 1 : vector<8x256xf32>, i32 -> vector<8x256xf32>
    %22 = vector.broadcast %3 : vector<1x256xf32> to vector<8x256xf32>
    %23 = arith.mulf %21, %22 : vector<8x256xf32>
    %c16_i32 = arith.constant 16 : i32
    %24 = tpu.dynamic_rotate %1 by %c16_i32 dim 1 : vector<8x256xf32>, i32 -> vector<8x256xf32>
    %25 = vector.broadcast %5 : vector<1x256xf32> to vector<8x256xf32>
    %26 = arith.mulf %24, %25 : vector<8x256xf32>
    %c15_i32 = arith.constant 15 : i32
    %27 = tpu.dynamic_rotate %1 by %c15_i32 dim 1 : vector<8x256xf32>, i32 -> vector<8x256xf32>
    %28 = vector.broadcast %7 : vector<1x256xf32> to vector<8x256xf32>
    %29 = arith.mulf %27, %28 : vector<8x256xf32>
    %c1_i32 = arith.constant 1 : i32
    %30 = tpu.dynamic_rotate %1 by %c1_i32 dim 1 : vector<8x256xf32>, i32 -> vector<8x256xf32>
    %31 = vector.broadcast %9 : vector<1x256xf32> to vector<8x256xf32>
    %32 = arith.mulf %30, %31 : vector<8x256xf32>
    %33 = vector.broadcast %11 : vector<1x256xf32> to vector<8x256xf32>
    %34 = arith.mulf %1, %33 : vector<8x256xf32>
    %c255_i32 = arith.constant 255 : i32
    %35 = tpu.dynamic_rotate %1 by %c255_i32 dim 1 : vector<8x256xf32>, i32 -> vector<8x256xf32>
    %36 = vector.broadcast %13 : vector<1x256xf32> to vector<8x256xf32>
    %37 = arith.mulf %35, %36 : vector<8x256xf32>
    %c241_i32 = arith.constant 241 : i32
    %38 = tpu.dynamic_rotate %1 by %c241_i32 dim 1 : vector<8x256xf32>, i32 -> vector<8x256xf32>
    %39 = vector.broadcast %15 : vector<1x256xf32> to vector<8x256xf32>
    %40 = arith.mulf %38, %39 : vector<8x256xf32>
    %c240_i32 = arith.constant 240 : i32
    %41 = tpu.dynamic_rotate %1 by %c240_i32 dim 1 : vector<8x256xf32>, i32 -> vector<8x256xf32>
    %42 = vector.broadcast %17 : vector<1x256xf32> to vector<8x256xf32>
    %43 = arith.mulf %41, %42 : vector<8x256xf32>
    %c239_i32 = arith.constant 239 : i32
    %44 = tpu.dynamic_rotate %1 by %c239_i32 dim 1 : vector<8x256xf32>, i32 -> vector<8x256xf32>
    %45 = vector.broadcast %19 : vector<1x256xf32> to vector<8x256xf32>
    %46 = arith.mulf %44, %45 : vector<8x256xf32>
    %47 = tpu.concatenate %23, %26, %29, %32, %34, %37, %40, %43, %46 in 0 : vector<8x256xf32>, vector<8x256xf32>, vector<8x256xf32>, vector<8x256xf32>, vector<8x256xf32>, vector<8x256xf32>, vector<8x256xf32>, vector<8x256xf32>, vector<8x256xf32> -> vector<72x256xf32>
    %48 = arith.truncf %47 : vector<72x256xf32> to vector<72x256xbf16>
    %cst = arith.constant dense<0.000000e+00> : vector<8x256xf32>
    %49 = tpu.matmul %20, %48, %cst {dimension_numbers = #tpu.dot_dimension_numbers<[1], [0], [0], [1], [0, 0, 1, 1], [], []>} : vector<8x72xbf16>, vector<72x256xbf16>, vector<8x256xf32> -> vector<8x256xf32>
    %c0_23 = arith.constant 0 : index
    %c0_24 = arith.constant 0 : index
    %50 = vector.load %arg6[%c0_23, %c0_24] : memref<8x1xf32, #tpu.memory_space<vmem>>, vector<8x1xf32>
    %51 = vector.broadcast %50 : vector<8x1xf32> to vector<8x256xf32>
    %52 = arith.addf %49, %51 : vector<8x256xf32>
    %cst_25 = arith.constant 0.000000e+00 : f32
    %53 = vector.broadcast %cst_25 : f32 to vector<8x256xf32>
    %54 = arith.maximumf %52, %53 : vector<8x256xf32>
    %c0_26 = arith.constant 0 : index
    %c0_27 = arith.constant 0 : index
    %55 = vector.load %arg4[%c0_26, %c0_27] : memref<8x72xbf16, #tpu.memory_space<vmem>>, vector<8x72xbf16>
    %c17_i32_28 = arith.constant 17 : i32
    %56 = tpu.dynamic_rotate %54 by %c17_i32_28 dim 1 : vector<8x256xf32>, i32 -> vector<8x256xf32>
    %57 = vector.broadcast %3 : vector<1x256xf32> to vector<8x256xf32>
    %58 = arith.mulf %56, %57 : vector<8x256xf32>
    %c16_i32_29 = arith.constant 16 : i32
    %59 = tpu.dynamic_rotate %54 by %c16_i32_29 dim 1 : vector<8x256xf32>, i32 -> vector<8x256xf32>
    %60 = vector.broadcast %5 : vector<1x256xf32> to vector<8x256xf32>
    %61 = arith.mulf %59, %60 : vector<8x256xf32>
    %c15_i32_30 = arith.constant 15 : i32
    %62 = tpu.dynamic_rotate %54 by %c15_i32_30 dim 1 : vector<8x256xf32>, i32 -> vector<8x256xf32>
    %63 = vector.broadcast %7 : vector<1x256xf32> to vector<8x256xf32>
    %64 = arith.mulf %62, %63 : vector<8x256xf32>
    %c1_i32_31 = arith.constant 1 : i32
    %65 = tpu.dynamic_rotate %54 by %c1_i32_31 dim 1 : vector<8x256xf32>, i32 -> vector<8x256xf32>
    %66 = vector.broadcast %9 : vector<1x256xf32> to vector<8x256xf32>
    %67 = arith.mulf %65, %66 : vector<8x256xf32>
    %68 = vector.broadcast %11 : vector<1x256xf32> to vector<8x256xf32>
    %69 = arith.mulf %54, %68 : vector<8x256xf32>
    %c255_i32_32 = arith.constant 255 : i32
    %70 = tpu.dynamic_rotate %54 by %c255_i32_32 dim 1 : vector<8x256xf32>, i32 -> vector<8x256xf32>
    %71 = vector.broadcast %13 : vector<1x256xf32> to vector<8x256xf32>
    %72 = arith.mulf %70, %71 : vector<8x256xf32>
    %c241_i32_33 = arith.constant 241 : i32
    %73 = tpu.dynamic_rotate %54 by %c241_i32_33 dim 1 : vector<8x256xf32>, i32 -> vector<8x256xf32>
    %74 = vector.broadcast %15 : vector<1x256xf32> to vector<8x256xf32>
    %75 = arith.mulf %73, %74 : vector<8x256xf32>
    %c240_i32_34 = arith.constant 240 : i32
    %76 = tpu.dynamic_rotate %54 by %c240_i32_34 dim 1 : vector<8x256xf32>, i32 -> vector<8x256xf32>
    %77 = vector.broadcast %17 : vector<1x256xf32> to vector<8x256xf32>
    %78 = arith.mulf %76, %77 : vector<8x256xf32>
    %c239_i32_35 = arith.constant 239 : i32
    %79 = tpu.dynamic_rotate %54 by %c239_i32_35 dim 1 : vector<8x256xf32>, i32 -> vector<8x256xf32>
    %80 = vector.broadcast %19 : vector<1x256xf32> to vector<8x256xf32>
    %81 = arith.mulf %79, %80 : vector<8x256xf32>
    %82 = tpu.concatenate %58, %61, %64, %67, %69, %72, %75, %78, %81 in 0 : vector<8x256xf32>, vector<8x256xf32>, vector<8x256xf32>, vector<8x256xf32>, vector<8x256xf32>, vector<8x256xf32>, vector<8x256xf32>, vector<8x256xf32>, vector<8x256xf32> -> vector<72x256xf32>
    %83 = arith.truncf %82 : vector<72x256xf32> to vector<72x256xbf16>
    %cst_36 = arith.constant dense<0.000000e+00> : vector<8x256xf32>
    %84 = tpu.matmul %55, %83, %cst_36 {dimension_numbers = #tpu.dot_dimension_numbers<[1], [0], [0], [1], [0, 0, 1, 1], [], []>} : vector<8x72xbf16>, vector<72x256xbf16>, vector<8x256xf32> -> vector<8x256xf32>
    %c0_37 = arith.constant 0 : index
    %c0_38 = arith.constant 0 : index
    %85 = vector.load %arg7[%c0_37, %c0_38] : memref<8x1xf32, #tpu.memory_space<vmem>>, vector<8x1xf32>
    %86 = vector.broadcast %85 : vector<8x1xf32> to vector<8x256xf32>
    %87 = arith.addf %84, %86 : vector<8x256xf32>
    %c0_39 = arith.constant 0 : index
    %c0_40 = arith.constant 0 : index
    %88 = vector.load %arg5[%c0_39, %c0_40] : memref<8x8xbf16, #tpu.memory_space<vmem>>, vector<8x8xbf16>
    %89 = arith.truncf %1 : vector<8x256xf32> to vector<8x256xbf16>
    %cst_41 = arith.constant dense<0.000000e+00> : vector<8x256xf32>
    %90 = tpu.matmul %88, %89, %cst_41 {dimension_numbers = #tpu.dot_dimension_numbers<[1], [0], [0], [1], [0, 0, 1, 1], [], []>} : vector<8x8xbf16>, vector<8x256xbf16>, vector<8x256xf32> -> vector<8x256xf32>
    %c0_42 = arith.constant 0 : index
    %c0_43 = arith.constant 0 : index
    %91 = vector.load %arg8[%c0_42, %c0_43] : memref<8x1xf32, #tpu.memory_space<vmem>>, vector<8x1xf32>
    %92 = vector.broadcast %91 : vector<8x1xf32> to vector<8x256xf32>
    %93 = arith.addf %90, %92 : vector<8x256xf32>
    %94 = arith.addf %87, %93 : vector<8x256xf32>
    %cst_44 = arith.constant 0.000000e+00 : f32
    %95 = vector.broadcast %cst_44 : f32 to vector<8x256xf32>
    %96 = arith.maximumf %94, %95 : vector<8x256xf32>
    %c0_45 = arith.constant 0 : index
    %c0_46 = arith.constant 0 : index
    %c0_47 = arith.constant 0 : index
    %97 = vector.load %arg9[%c0_45, %c0_46, %c0_47] : memref<1x8x256xf32, #tpu.memory_space<vmem>>, vector<1x8x256xf32>
    %98 = vector.shape_cast %97 : vector<1x8x256xf32> to vector<8x256xf32>
    %99 = vector.shape_cast %96 : vector<8x256xf32> to vector<1x8x256xf32>
    tpu.vector_store %arg9[%c0_45, %c0_46, %c0_47], %99 {strides = array<i32>} : memref<1x8x256xf32, #tpu.memory_space<vmem>>, vector<1x8x256xf32>,
    return
  }
  func.func @transform_0(%arg0: i32) -> (i32, i32, i32) {
    %c0_i32 = arith.constant 0 : i32
    %c0_i32_0 = arith.constant 0 : i32
    %c0_i32_1 = arith.constant 0 : i32
    return %arg0, %c0_i32, %c0_i32_0 : i32, i32, i32
  }
  func.func @transform_1(%arg0: i32) -> (i32, i32, i32) {
    %c0_i32 = arith.constant 0 : i32
    %c0_i32_0 = arith.constant 0 : i32
    %c0_i32_1 = arith.constant 0 : i32
    %c0_i32_2 = arith.constant 0 : i32
    return %c0_i32, %c0_i32_0, %c0_i32_1 : i32, i32, i32
  }
  func.func @transform_2(%arg0: i32) -> (i32, i32) {
    %c0_i32 = arith.constant 0 : i32
    %c0_i32_0 = arith.constant 0 : i32
    %c0_i32_1 = arith.constant 0 : i32
    return %c0_i32, %c0_i32_0 : i32, i32
  }
  func.func @transform_3(%arg0: i32) -> (i32, i32) {
    %c0_i32 = arith.constant 0 : i32
    %c0_i32_0 = arith.constant 0 : i32
    %c0_i32_1 = arith.constant 0 : i32
    return %c0_i32, %c0_i32_0 : i32, i32
  }
  func.func @transform_4(%arg0: i32) -> (i32, i32) {
    %c0_i32 = arith.constant 0 : i32
    %c0_i32_0 = arith.constant 0 : i32
    %c0_i32_1 = arith.constant 0 : i32
    return %c0_i32, %c0_i32_0 : i32, i32
  }
  func.func @transform_5(%arg0: i32) -> (i32, i32) {
    %c0_i32 = arith.constant 0 : i32
    %c0_i32_0 = arith.constant 0 : i32
    %c0_i32_1 = arith.constant 0 : i32
    return %c0_i32, %c0_i32_0 : i32, i32
  }
  func.func @transform_6(%arg0: i32) -> (i32, i32) {
    %c0_i32 = arith.constant 0 : i32
    %c0_i32_0 = arith.constant 0 : i32
    %c0_i32_1 = arith.constant 0 : i32
    return %c0_i32, %c0_i32_0 : i32, i32
  }
  func.func @transform_7(%arg0: i32) -> (i32, i32) {
    %c0_i32 = arith.constant 0 : i32
    %c0_i32_0 = arith.constant 0 : i32
    %c0_i32_1 = arith.constant 0 : i32
    return %c0_i32, %c0_i32_0 : i32, i32
  }
  func.func @transform_8(%arg0: i32) -> (i32, i32, i32) {
    %c0_i32 = arith.constant 0 : i32
    %c0_i32_0 = arith.constant 0 : i32
    %c0_i32_1 = arith.constant 0 : i32
    return %arg0, %c0_i32, %c0_i32_0 : i32, i32, i32
  }
}

</mosaic_0001>

<bundles_post_ra>
// kernel: tpu_custom_call.1
= control target key start
LH: loop header
LB: loop body
LE: loop exit
PB: predicated region body
PF: predicated region fallthrough
CT: control target
= control target key end

     0   :  { %13 = vsyncpa [#allocation3], 0  ;;  %s1549_s0 = inlined_call_operand.hbm [shape: f32[2,8,256], index: 0, kind: input, shape index: {}]   ;;  %s1550_s1 = inlined_call_operand.vmem [shape: f32[9,1,256], index: 1, kind: input, shape index: {}]   ;;  %s1551_s2 = inlined_call_operand.vmem [shape: bf16[8,72], index: 2, kind: input, shape index: {}]   ;;  %s1552_s3 = inlined_call_operand.vmem [shape: bf16[8,72], index: 3, kind: input, shape index: {}]   ;;  %s1553_s4 = inlined_call_operand.vmem [shape: bf16[8,8], index: 4, kind: input, shape index: {}]   ;;  %s1554_s5 = inlined_call_operand.vmem [shape: f32[8,1], index: 5, kind: input, shape index: {}]   ;;  %s1555_s6 = inlined_call_operand.vmem [shape: f32[8,1], index: 6, kind: input, shape index: {}]   ;;  %s1556_s7 = inlined_call_operand.vmem [shape: f32[8,1], index: 7, kind: input, shape index: {}]   ;;  %s1557_s8 = inlined_call_operand.hbm [shape: f32[2,8,256], index: 8, kind: output, shape index: {}]  }
   0x1   :  { %15 = vsyncpa [#allocation3 + $0x1], 0 }
   0x2   :  { %16 = vsyncpa [#allocation4], 0 }
   0x3   :  { %18 = vsyncpa [#allocation4 + $0x1], 0  ;;  %s1109_s27 = smov 0   ;;  %s1111_s28 = smov 0  }
   0x4   :  { %s1113_s29 = smov 0   ;;  %s1115_s30 = smov 0  }
   0x5 LB: > { %s1130_s9 = sadd.s32 4294967295, %s1051_s30   ;;  %s872_s10 = sadd.s32 4294967294, %s1051_s30   ;;  %s1051_s30 = sphi %s1115_s30, %s1581_s30   ;;  %s1047_s29 = sphi %s1113_s29, %s1580_s29   ;;  %s1043_s28 = sphi %s1111_s28, %s1579_s28   ;;  %s1039_s27 = sphi %s1109_s27, %s1578_s27  }
   0x6   : > { %s1134_s11 = sadd.s32 1, %s1051_s30   ;;  %s31_s12 = sadd.s32 1, %s1047_s29 }
   0x7   : > { %s28_s13 = ssub.s32 %s1051_s30, %s1134_s11  ;;  %p38_p0 = scmp.ne.s32.totalorder %s1047_s29, %s1043_s28 }
   0x8   : > { %p29_p1 = scmp.eq.s32.totalorder %s28_s13, 0  ;;  %p39_p2 = scmp.eq.s32.totalorder %s1051_s30, 0 }
   0x9   : > { %p44_p3 = scmp.ne.s32.totalorder %s1043_s28, %s1039_s27  ;;  %p45_p4 = scmp.eq.s32.totalorder %s1130_s9, 0 }
   0xa   : > { %s1146_s14 = scalar_select %p29_p1, %s1047_s29, %s31_s12  }
   0xb   : > { %p1148_p5 = por %p39_p2, %p38_p0  ;;  %p1152_p6 = por %p45_p4, %p44_p3 }
   0xc   : > { %1563 = sst [smem:[#allocation8_spill]] %s1146_s14  ;;  %p215_p7 = scmp.eq.s32.totalorder %s1130_s9, 1 }
   0xd   : > { %s1565_s16 = scalar_select %p1152_p6, 1, 0 }
   0xe   : > { %p221_p8 = scmp.eq.s32.totalorder %s872_s10, 1  ;;  %p914_p10 = scmp.lt.s32.totalorder %s1051_s30, 2 }
   0xf   : > { %p1159_p11 = por %p215_p7, %p38_p0  ;;  %s262_s19 = sand.u32 1, %s1047_s29  }
  0x10   : > { %p1163_p12 = por %p221_p8, %p44_p3  ;;  %s900_s20 = sshll.u32 %s1051_s30, 8 }
  0x11   : > { %s1566_s17 = scalar_select %p1159_p11, 1, 0 }
  0x12   : > { %s1567_s18 = scalar_select %p1163_p12, 1, 0 }
  0x13   : > { %s875_s21 = sshll.u32 %s262_s19, 4  ;;  %s1172_s24 = scalar_lea.hbm %s1549_s0, %s900_s20 }
  0x14   : > { %s266_s25 = scalar_lea.vmem [#allocation2], %s875_s21  ;;  %p1176_p13 = pnand %p914_p10, %p1148_p5 }
  0x15   : > { %s274_s26 = sshll.u32 %s266_s25, 4  ;;  %s263_s12 = scalar_lea.sflag [#allocation3], %s262_s19  ;;  %s1180_s26 = int_to_ptr.vmem [resolvable:$true] %s274_s26 }
  0x16   : > { %s959_s13 = scalar_lea.hbm %s1172_s24, 256  ;;  %p961_p3 = pneg %p1176_p13 }
  0x17   : > { %p960_p2 = scmp.ne.s32.totalorder %s1172_s24, %s959_s13  ;;  %s964_s15 = scalar_lea.hbm %s1549_s0, 512 }
  0x18   : > { %p965_p5 = scmp.lt.s32.totalorder %s1172_s24, %s1549_s0  ;;  %p966_p8 = scmp.lt.s32.totalorder %s964_s15, %s959_s13 }
  0x19   : > { %p962_p4 = pnand %p961_p3, %p960_p2 }
  0x1a   : > { %p967_p10 = por %p966_p8, %p965_p5 }
  0x1b   : > { %p963_p7 = pneg %p962_p4 }
  0x1d   : > { %p968_p9 = pnand %p967_p10, %p963_p7 }
  0x1f   : > { %971 = shalt.err (!%p968_p9)
}
  0x20   : > { %s972_s19 = scalar_lea.vmem %s1180_s26, 256  ;;  %s1053_s25 = smov [#allocation2]  }
  0x21   : > { %p973_p0 = scmp.ne.s32.totalorder %s1180_s26, %s972_s19  ;;  %s977_s14 = sshll.u32 %s1053_s25, 4  ;;  %s978_s14 = int_to_ptr.vmem [resolvable:$false] %s977_s14 }
  0x22   : > { %s979_s20 = scalar_lea.vmem %s978_s14, 512  ;;  %p980_p4 = scmp.lt.s32.totalorder %s1180_s26, %s978_s14 }
  0x23   : > { %p975_p1 = pnand %p973_p0, %p961_p3  ;;  %p981_p12 = scmp.lt.s32.totalorder %s979_s20, %s972_s19 }
  0x25   : > { %p976_p2 = pneg %p975_p1  ;;  %p982_p11 = por %p981_p12, %p980_p4 }
  0x27   : > { %p983_p6 = pnand %p982_p11, %p976_p2 }
  0x29   : > { %986 = shalt.err (!%p983_p6)
}
  0x2a   : > { %909 = dma.hbm_to_vmem [thread:$0]  (!%p1176_p13), %s1172_s24, 256, %s1180_s26, %s263_s12  }
  0x2b   : > { %p1569_p9 = scmp.lt.s32.totalorder %s1051_s30, 3  ;;  %p1570_p7 = scmp.ge.s32.totalorder %s1051_s30, 1 }
  0x2d   : > { %p280_p0 = pnand %p1570_p7, %p1569_p9 }
  0x2e   : > { %s1207_s13 = sand.u32 (!%p280_p0), 1, %s1043_s28   ;;  %p1571_p6 = scmp.ne.s32.totalorder (!%p280_p0), %s1565_s16, 0 }
  0x2f   : > { %283 = sbr.rel (%p280_p0) target bundleno = 773 (0x305), region = 52  ;;  %s1560_s14 = sshll.u32 (!%p280_p0), %s1207_s13, 4 }
  0x30   : > { %s286_s21 = scalar_lea.sflag (!%p280_p0), [#allocation3], %s1207_s13  ;;  %s289_s10 = scalar_lea.vmem (!%p280_p0), [#allocation2], %s1560_s14 }
  0x34   : > { %1030 = dma.done.wait (%p1571_p6), %s286_s21, 256  }
  0x35   : > { %1032 = vsyncadd (%p1571_p6), %s286_s21, 4294967040  ;;  %v1217_v0 = vld [vmem:[%s289_s10] sm:$0xff]  ;;  %s1054_s24 = smov 113   ;;  %s1055_s26 = smov 111   ;;  %v1223_v1 = vld [vmem:[%s289_s10 + $0x8] sm:$0xff]  ;;  %v1060_v2 = vmov 0   ;;  %v347_v4 = vlaneseq }
  0x36   : > { %458 = vrot.lane.b32.xlu1 %v1217_v0, %s1054_s24  ;;  %498 = vrot.lane.b32.xlu0 %v1217_v0, %s1055_s26  ;;  %s1056_s16 = smov 112   ;;  %s1057_s12 = smov 127   ;;  %v528_v3 = vld [vmem:[%s1554_s5] sm:$0xff]  ;;  %v888_v9 = vld [vmem:[%s1550_s1 + $0x10] sm:$0x3]  ;;  %vm538_vm3 = vcmask 1043456  }
  0x37   : > { %s1058_s15 = smov 15   ;;  %s1059_s22 = smov 1   ;;  %577 = vmatprep.mubr.bf16.mxu0 %v1060_v2  ;;  %957 = vset.pattern.permute.xlu0 %v1060_v2  ;;  %v354_v5 = vshrl.u32 %v347_v4, 7  ;;  %v1260_v6 = vand.u32 127, %v347_v4  ;;  %v886_v12 = vld [vmem:[%s1550_s1 + $0xc] sm:$0x3] }
  0x38   : > { %712 = vmatprep.mubr.bf16.mxu1 %v1060_v2  ;;  %958 = vset.pattern.permute.xlu1 %v1060_v2  ;;  %s1061_s23 = smov 17   ;;  %s1561_s19 = smov 16   ;;  %v887_v14 = vld [vmem:[%s1550_s1 + $0xe] sm:$0x3]  ;;  %v885_v19 = vld [vmem:[%s1550_s1 + $0xa] sm:$0x3] }
  0x39   : > { %v1262_v7 = vsub.s32 0, %v354_v5  ;;  %v1264_v8 = vsub.s32 1, %v354_v5  ;;  %vm502_vm0 = vcmp.lt.s32.totalorder %v1260_v6, 111  ;;  %vm462_vm1 = vcmp.lt.s32.totalorder %v1260_v6, 113  ;;  %v884_v24 = vld [vmem:[%s1550_s1 + $0x8] sm:$0x3] }
  0x3a   : > { %460 = vrot.lane.b32.xlu1 %v1223_v1, %s1054_s24  ;;  %500 = vrot.lane.b32.xlu0 %v1223_v1, %s1055_s26  ;;  %vm482_vm2 = vcmp.lt.s32.totalorder %v1260_v6, 112  ;;  %vm442_vm4 = vcmp.lt.s32.totalorder %v1260_v6, 127  ;;  %v882_v55 = vld [vmem:[%s1550_s1 + $0x4] sm:$0x3]  ;;  %v883_v56 = vld [vmem:[%s1550_s1 + $0x6] sm:$0x3] }
  0x3b   : > { %v1274_v13 = vrot.slane %v888_v9, %v1262_v7  ;;  %v1280_v15 = vrot.slane %v888_v9, %v1264_v8  ;;  %v1284_v16 = vrot.slane %v886_v12, %v1262_v7  ;;  %v1291_v20 = vrot.slane %v886_v12, %v1264_v8  ;;  %s901_s25 = sshll.u32 %s1130_s9, 8  ;;  %s1573_s20 = sshll.u32 %s1207_s13, 4 }
  0x3c   : > { %v1298_v23 = vrot.slane %v887_v14, %v1262_v7  ;;  %v1307_v27 = vrot.slane %v887_v14, %v1264_v8  ;;  %v1314_v30 = vrot.slane %v885_v19, %v1262_v7  ;;  %v1317_v35 = vrot.slane %v884_v24, %v1264_v8  ;;  %s321_s14 = scalar_lea.vmem [#allocation5], %s1573_s20  ;;  %p1574_p12 = scmp.ne.s32.totalorder %s1566_s17, 0 }
  0x3d   : > { %v1320_v36 = vrot.slane %v884_v24, %v1262_v7  ;;  %v1328_v40 = vrot.slane %v885_v19, %v1264_v8  ;;  %vm389_vm5 = vcmp.lt.s32.totalorder %v1260_v6, 15  ;;  %v1353_v61 = vrot.slane %v882_v55, %v1262_v7  ;;  %s1063_s9 = smov [#allocation5]  }
  0x3e   : > { %480 = vrot.lane.b32.xlu1 %v1223_v1, %s1056_s16  ;;  %478 = vrot.lane.b32.xlu0 %v1217_v0, %s1056_s16  ;;  %v437_v49 = vmul.f32 %v1317_v35, %v1223_v1  ;;  %v1356_v62 = vrot.slane %v882_v55, %v1264_v8  ;;  %vm409_vm6 = vcmp.lt.s32.totalorder %v1260_v6, 1  ;;  %v1360_v63 = vrot.slane %v883_v56, %v1262_v7 }
  0x3f   : > { %v436_v50 = vmul.f32 %v1320_v36, %v1217_v0  ;;  %vm349_vm7 = vcmp.lt.s32.totalorder %v1260_v6, 17  ;;  %vm369_vm8 = vcmp.lt.s32.totalorder %v1260_v6, 16  ;;  %vm534_vm9 = vcmask 588800  }
  0x40   : > { %vm730_vm10 = vcmask 64512  }
  0x42   : > { %440 = vrot.lane.b32.xlu1 %v1223_v1, %s1057_s12  ;;  %438 = vrot.lane.b32.xlu0 %v1217_v0, %s1057_s12 }
  0x46   : > { %387 = vrot.lane.b32.xlu1 %v1223_v1, %s1058_s15  ;;  %385 = vrot.lane.b32.xlu0 %v1217_v0, %s1058_s15 }
  0x4a   : > { %407 = vrot.lane.b32.xlu1 %v1223_v1, %s1059_s22  ;;  %405 = vrot.lane.b32.xlu0 %v1217_v0, %s1059_s22 }
  0x4e   : > { %345 = vrot.lane.b32.xlu1 %v1223_v1, %s1061_s23  ;;  %343 = vrot.lane.b32.xlu0 %v1217_v0, %s1061_s23 }
  0x52   : > { %367 = vrot.lane.b32.xlu1 %v1223_v1, %s1561_s19  ;;  %365 = vrot.lane.b32.xlu0 %v1217_v0, %s1561_s19  ;;  %s802_s19 = sshll.u32 %s321_s14, 4  ;;  %s803_s19 = int_to_ptr.vmem [resolvable:$true] %s802_s19 }
  0x53   : > { %s987_s21 = scalar_lea.vmem %s803_s19, 256 }
  0x54   : > { %p988_p11 = scmp.ne.s32.totalorder %s803_s19, %s987_s21 }
  0x56   : > { %531 = vperm.xlu0 %957, %v528_v3   ;;  %v1363_v3 = vrot.slane %v883_v56, %v1264_v8  ;;  %p989_p13 = pnand %p988_p11, %p1574_p12 }
  0x58   : > { %p990_p1 = pneg %p989_p13 }
  0xa8   : > { %v459_v10 = vpop.permute.xlu1 %458  ;;  %v499_v11 = vpop.permute.xlu0 %498 }
  0xac   : > { %v461_v17 = vpop.permute.xlu1 %460  ;;  %v501_v18 = vpop.permute.xlu0 %500 }
  0xad   : > { %v503_v21 = vsel %vm502_vm0, %v499_v11, %v501_v18  ;;  %v504_v22 = vsel %vm502_vm0, %v501_v18, %v499_v11  ;;  %v463_v25 = vsel %vm462_vm1, %v459_v10, %v461_v17  ;;  %v464_v29 = vsel %vm462_vm1, %v461_v17, %v459_v10 }
  0xae   : > { %v516_v26 = vmul.f32 %v1274_v13, %v503_v21  ;;  %v517_v28 = vmul.f32 %v1280_v15, %v504_v22  ;;  %v476_v37 = vmul.f32 %v1284_v16, %v463_v25  ;;  %v477_v41 = vmul.f32 %v1291_v20, %v464_v29  ;;  %v325_v21 = vld [vmem:[%s1550_s1] sm:$0x3]  ;;  %v881_v22 = vld [vmem:[%s1550_s1 + $0x2] sm:$0x3] }
  0xaf   : > { %v1385_v29 = vrot.slane %v325_v21, %v1262_v7 }
  0xb0   : > { %v481_v31 = vpop.permute.xlu1 %480  ;;  %v479_v32 = vpop.permute.xlu0 %478  ;;  %v527_v33 = vpack.c.bf16 %v517_v28, %v517_v28  ;;  %v526_v34 = vpack.c.bf16 %v516_v26, %v516_v26 }
  0xb1   : > { %v483_v38 = vsel %vm482_vm2, %v479_v32, %v481_v31  ;;  %v484_v39 = vsel %vm482_vm2, %v481_v31, %v479_v32  ;;  %v1388_v31 = vrot.slane %v325_v21, %v1264_v8  ;;  %v1392_v32 = vrot.slane %v881_v22, %v1262_v7 }
  0xb2   : > { %v496_v42 = vmul.f32 %v1298_v23, %v483_v38  ;;  %v497_v43 = vmul.f32 %v1307_v27, %v484_v39  ;;  %889 = vmatprep.subr.msk.bf16.mxu0 %vm538_vm3, %v527_v33  ;;  %v540_v44 = vsel %vm538_vm3, %v526_v34, 0  ;;  %v1395_v33 = vrot.slane %v881_v22, %v1264_v8 }
  0xb3   : > { %552 = vmatpush1.bf16.msra.mxu0 %v540_v44 }
  0xb4   : > { %v441_v45 = vpop.permute.xlu1 %440  ;;  %v439_v46 = vpop.permute.xlu0 %438  ;;  %v525_v47 = vpack.c.bf16 %v497_v43, %v477_v41  ;;  %v524_v48 = vpack.c.bf16 %v496_v42, %v476_v37 }
  0xb5   : > { %v443_v51 = vsel %vm442_vm4, %v439_v46, %v441_v45  ;;  %v444_v52 = vsel %vm442_vm4, %v441_v45, %v439_v46 }
  0xb6   : > { %v456_v53 = vmul.f32 %v1314_v30, %v443_v51  ;;  %v457_v54 = vmul.f32 %v1328_v40, %v444_v52  ;;  %553 = vmatprep.subr.bf16.mxu0 %v525_v47  ;;  %v342_v47 = vld [vmem:[%s1551_s2] sm:$0xf] }
  0xb7   : > { %554 = vmatpush1.bf16.msra.mxu0 %v524_v48 }
  0xb8   : > { %v388_v57 = vpop.permute.xlu1 %387  ;;  %v386_v58 = vpop.permute.xlu0 %385  ;;  %v523_v59 = vpack.c.bf16 %v457_v54, %v437_v49  ;;  %v522_v60 = vpack.c.bf16 %v456_v53, %v436_v50 }
  0xb9   : > { %v390_v4 = vsel %vm389_vm5, %v386_v58, %v388_v57  ;;  %v391_v5 = vsel %vm389_vm5, %v388_v57, %v386_v58  ;;  %v722_v57 = vpack.c.bf16 %v1217_v0, %v1217_v0  ;;  %v665_v0 = vld [vmem:[%s1555_s6] sm:$0xff] }
  0xba   : > { %555 = vmatprep.subr.bf16.mxu0 %v523_v59  ;;  %v403_v14 = vmul.f32 %v1353_v61, %v391_v5  ;;  %v404_v17 = vmul.f32 %v1356_v62, %v390_v4  ;;  %v721_v59 = vld [vmem:[%s1553_s4] sm:$0xf] }
  0xbb   : > { %556 = vmatpush1.bf16.msra.mxu0 %v522_v60  ;;  %v735_v58 = vsel %vm538_vm3, %v722_v57, 0 }
  0xbc   : > { %v408_v9 = vpop.permute.xlu1 %407  ;;  %v406_v10 = vpop.permute.xlu0 %405 }
  0xbd   : > { %v410_v11 = vsel %vm409_vm6, %v406_v10, %v408_v9  ;;  %v411_v12 = vsel %vm409_vm6, %v408_v9, %v406_v10 }
  0xbe   : > { %v423_v18 = vmul.f32 %v1360_v63, %v411_v12  ;;  %v424_v19 = vmul.f32 %v1363_v3, %v410_v11 }
  0xc0   : > { %v346_v24 = vpop.permute.xlu1 %345  ;;  %v344_v25 = vpop.permute.xlu0 %343  ;;  %v521_v26 = vpack.c.bf16 %v424_v19, %v404_v17  ;;  %v520_v28 = vpack.c.bf16 %v423_v18, %v403_v14 }
  0xc1   : > { %v350_v34 = vsel %vm349_vm7, %v344_v25, %v346_v24  ;;  %v351_v37 = vsel %vm349_vm7, %v346_v24, %v344_v25 }
  0xc2   : > { %557 = vmatprep.subr.bf16.mxu0 %v521_v26  ;;  %v363_v7 = vmul.f32 %v1385_v29, %v351_v37  ;;  %v364_v8 = vmul.f32 %v1388_v31, %v350_v34 }
  0xc3   : > { %558 = vmatpush1.bf16.msra.mxu0 %v520_v28 }
  0xc4   : > { %v368_v38 = vpop.permute.xlu1 %367  ;;  %v366_v39 = vpop.permute.xlu0 %365 }
  0xc5   : > { %v370_v41 = vsel %vm369_vm8, %v366_v39, %v368_v38  ;;  %v371_v42 = vsel %vm369_vm8, %v368_v38, %v366_v39 }
  0xc6   : > { %v383_v43 = vmul.f32 %v1392_v32, %v371_v42  ;;  %v384_v44 = vmul.f32 %v1395_v33, %v370_v41 }
  0xc8   : > { %v519_v45 = vpack.c.bf16 %v384_v44, %v364_v8  ;;  %v518_v46 = vpack.c.bf16 %v383_v43, %v363_v7 }
  0xca   : > { %559 = vmatprep.subr.bf16.mxu0 %v519_v45 }
  0xcb   : > { %560 = vmatpush1.bf16.msra.mxu0 %v518_v46 }
  0xce   : > { %890 = vmatmul.mubr.msk.bf16.vlgmr.msra.gmra.mxu0 %vm534_vm9, %v342_v47 }
  0xcf   : > { %772 = vmatprep.mubr.bf16.mxu0 %v1060_v2  ;;  %v723_v2 = vpack.c.bf16 %v1223_v1, %v1223_v1  ;;  %v724_v1 = vld [vmem:[%s1556_s7] sm:$0xff] }
  0xd1   : > { %v532_v48 = vpop.permute.xlu0 %531  ;;  %893 = vmatprep.subr.msk.bf16.mxu0 %vm538_vm3, %v723_v2 }
  0xd2   : > { %755 = vmatpush1.bf16.msra.mxu0 %v735_v58 }
  0xd6   : > { %894 = vmatmul.mubr.msk.bf16.vlgmr.msra.gmra.mxu0 %vm730_vm10, %v721_v59 }
 0x18e   : > { %v579_v49 = vpop.f32.mrf.mxu0 }
 0x18f   : > { %v580_v50 = vadd.f32 %v579_v49, %v532_v48 }
 0x190   : > { %v581_v51 = vpop.f32.mrf.mxu0 }
 0x191   : > { %v1414_v52 = vmax.f32 %v580_v50, 0.0  ;;  %v582_v53 = vadd.f32 %v581_v51, %v532_v48 }
 0x192   : > { %v583_v54 = vpop.f32.mrf.mxu0 }
 0x193   : > { %631 = vrot.lane.b32.xlu0 %v1414_v52, %s1054_s24  ;;  %647 = vrot.lane.b32.xlu1 %v1414_v52, %s1055_s26  ;;  %v587_v56 = vmax.f32 %v582_v53, 0.0 }
 0x194   : > { %v584_v55 = vpop.f32.mrf.mxu0 }
 0x196   : > { %v774_v6 = vpop.f32.mrf.mxu0 }
 0x197   : > { %639 = vrot.lane.b32.xlu0 %v1414_v52, %s1056_s16  ;;  %649 = vrot.lane.b32.xlu1 %v587_v56, %s1055_s26 }
 0x19b   : > { %623 = vrot.lane.b32.xlu0 %v1414_v52, %s1057_s12  ;;  %633 = vrot.lane.b32.xlu1 %v587_v56, %s1054_s24 }
 0x19f   : > { %605 = vrot.lane.b32.xlu0 %v1414_v52, %s1058_s15  ;;  %641 = vrot.lane.b32.xlu1 %v587_v56, %s1056_s16  ;;  %s1572_s16 = smov 16  }
 0x1a3   : > { %613 = vrot.lane.b32.xlu0 %v1414_v52, %s1059_s22  ;;  %625 = vrot.lane.b32.xlu1 %v587_v56, %s1057_s12  ;;  %s788_s12 = scalar_lea.sflag [#allocation4], %s1207_s13 }
 0x1a7   : > { %589 = vrot.lane.b32.xlu0 %v1414_v52, %s1061_s23  ;;  %607 = vrot.lane.b32.xlu1 %v587_v56, %s1058_s15  ;;  %s991_s15 = sshll.u32 %s1063_s9, 4  ;;  %s992_s15 = int_to_ptr.vmem [resolvable:$false] %s991_s15 }
 0x1a8   : > { %s993_s10 = scalar_lea.vmem %s992_s15, 512  ;;  %p994_p3 = scmp.lt.s32.totalorder %s803_s19, %s992_s15 }
 0x1a9   : > { %p995_p5 = scmp.lt.s32.totalorder %s993_s10, %s987_s21 }
 0x1ab   : > { %597 = vrot.lane.b32.xlu0 %v1414_v52, %s1572_s16  ;;  %615 = vrot.lane.b32.xlu1 %v587_v56, %s1059_s22  ;;  %p996_p8 = por %p995_p5, %p994_p3 }
 0x1ad   : > { %p997_p10 = pnand %p996_p8, %p990_p1 }
 0x1af   : > { %668 = vperm.xlu0 %957, %v665_v0   ;;  %591 = vrot.lane.b32.xlu1 %v587_v56, %s1061_s23 }
 0x1b3   : > { %599 = vrot.lane.b32.xlu1 %v587_v56, %s1572_s16  ;;  %s800_s16 = scalar_lea.hbm %s1557_s8, %s901_s25 }
 0x1b7   : > { %727 = vperm.xlu1 %958, %v724_v1  }
 0x205   : > { %v632_v60 = vpop.permute.xlu0 %631  ;;  %v648_v4 = vpop.permute.xlu1 %647 }
 0x209   : > { %v640_v5 = vpop.permute.xlu0 %639  ;;  %v650_v9 = vpop.permute.xlu1 %649 }
 0x20a   : > { %v651_v10 = vsel %vm502_vm0, %v648_v4, %v650_v9  ;;  %v652_v11 = vsel %vm502_vm0, %v650_v9, %v648_v4 }
 0x20b   : > { %v653_v12 = vmul.f32 %v651_v10, %v1274_v13  ;;  %v654_v14 = vmul.f32 %v652_v11, %v1280_v15 }
 0x20d   : > { %v624_v17 = vpop.permute.xlu0 %623  ;;  %v634_v18 = vpop.permute.xlu1 %633  ;;  %v664_v19 = vpack.c.bf16 %v654_v14, %v654_v14  ;;  %v663_v21 = vpack.c.bf16 %v653_v12, %v653_v12 }
 0x20e   : > { %v635_v24 = vsel %vm462_vm1, %v632_v60, %v634_v18  ;;  %v636_v25 = vsel %vm462_vm1, %v634_v18, %v632_v60 }
 0x20f   : > { %891 = vmatprep.subr.msk.bf16.mxu1 %vm538_vm3, %v664_v19  ;;  %v675_v22 = vsel %vm538_vm3, %v663_v21, 0  ;;  %v637_v28 = vmul.f32 %v635_v24, %v1284_v16  ;;  %v638_v34 = vmul.f32 %v636_v25, %v1291_v20  ;;  %v622_v20 = vmul.f32 %v587_v56, %v1317_v35 }
 0x210   : > { %687 = vmatpush1.bf16.msra.mxu1 %v675_v22 }
 0x211   : > { %v642_v26 = vpop.permute.xlu1 %641  ;;  %v606_v37 = vpop.permute.xlu0 %605 }
 0x212   : > { %v643_v13 = vsel %vm482_vm2, %v640_v5, %v642_v26  ;;  %v644_v15 = vsel %vm482_vm2, %v642_v26, %v640_v5  ;;  %v588_v5 = vld [vmem:[%s1552_s3] sm:$0xf] }
 0x213   : > { %v645_v38 = vmul.f32 %v643_v13, %v1298_v23  ;;  %v646_v39 = vmul.f32 %v644_v15, %v1307_v27  ;;  %v621_v23 = vmul.f32 %v1414_v52, %v1320_v36 }
 0x215   : > { %v626_v41 = vpop.permute.xlu1 %625  ;;  %v662_v42 = vpack.c.bf16 %v646_v39, %v638_v34  ;;  %v661_v7 = vpack.c.bf16 %v645_v38, %v637_v28  ;;  %v614_v27 = vpop.permute.xlu0 %613 }
 0x216   : > { %v627_v8 = vsel %vm442_vm4, %v624_v17, %v626_v41  ;;  %v628_v43 = vsel %vm442_vm4, %v626_v41, %v624_v17 }
 0x217   : > { %v629_v44 = vmul.f32 %v627_v8, %v1314_v30  ;;  %v630_v16 = vmul.f32 %v628_v43, %v1328_v40  ;;  %688 = vmatprep.subr.bf16.mxu1 %v662_v42 }
 0x218   : > { %689 = vmatpush1.bf16.msra.mxu1 %v661_v7 }
 0x219   : > { %v608_v45 = vpop.permute.xlu1 %607  ;;  %v660_v46 = vpack.c.bf16 %v630_v16, %v622_v20  ;;  %v659_v47 = vpack.c.bf16 %v629_v44, %v621_v23  ;;  %v590_v49 = vpop.permute.xlu0 %589 }
 0x21a   : > { %v609_v48 = vsel %vm389_vm5, %v606_v37, %v608_v45  ;;  %v610_v30 = vsel %vm389_vm5, %v608_v45, %v606_v37 }
 0x21b   : > { %690 = vmatprep.subr.bf16.mxu1 %v660_v46  ;;  %v611_v50 = vmul.f32 %v610_v30, %v1353_v61  ;;  %v612_v51 = vmul.f32 %v609_v48, %v1356_v62 }
 0x21c   : > { %691 = vmatpush1.bf16.msra.mxu1 %v659_v47 }
 0x21d   : > { %v616_v40 = vpop.permute.xlu1 %615  ;;  %v598_v58 = vpop.permute.xlu0 %597 }
 0x21e   : > { %v617_v35 = vsel %vm409_vm6, %v614_v27, %v616_v40  ;;  %v618_v36 = vsel %vm409_vm6, %v616_v40, %v614_v27 }
 0x21f   : > { %v619_v52 = vmul.f32 %v618_v36, %v1360_v63  ;;  %v620_v53 = vmul.f32 %v617_v35, %v1363_v3 }
 0x221   : > { %v592_v54 = vpop.permute.xlu1 %591  ;;  %v658_v55 = vpack.c.bf16 %v620_v53, %v612_v51  ;;  %v657_v56 = vpack.c.bf16 %v619_v52, %v611_v50 }
 0x222   : > { %v593_v2 = vsel %vm349_vm7, %v590_v49, %v592_v54  ;;  %v594_v57 = vsel %vm349_vm7, %v592_v54, %v590_v49 }
 0x223   : > { %692 = vmatprep.subr.bf16.mxu1 %v658_v55  ;;  %v595_v63 = vmul.f32 %v594_v57, %v1385_v29  ;;  %v596_v3 = vmul.f32 %v593_v2, %v1388_v31  ;;  %v776_v29 = vpop.f32.mrf.mxu0 }
 0x224   : > { %693 = vmatpush1.bf16.msra.mxu1 %v657_v56 }
 0x225   : > { %v600_v59 = vpop.permute.xlu1 %599  ;;  %v778_v9 = vpop.f32.mrf.mxu0 }
 0x226   : > { %v601_v61 = vsel %vm369_vm8, %v598_v58, %v600_v59  ;;  %v602_v62 = vsel %vm369_vm8, %v600_v59, %v598_v58 }
 0x227   : > { %v603_v0 = vmul.f32 %v602_v62, %v1392_v32  ;;  %v604_v1 = vmul.f32 %v601_v61, %v1395_v33  ;;  %v779_v31 = vpop.f32.mrf.mxu0 }
 0x229   : > { %v656_v60 = vpack.c.bf16 %v604_v1, %v596_v3  ;;  %v655_v4 = vpack.c.bf16 %v603_v0, %v595_v63 }
 0x22a   : > { %v669_v11 = vpop.permute.xlu0 %668 }
 0x22b   : > { %694 = vmatprep.subr.bf16.mxu1 %v656_v60 }
 0x22c   : > { %695 = vmatpush1.bf16.msra.mxu1 %v655_v4 }
 0x22f   : > { %892 = vmatmul.mubr.msk.bf16.vlgmr.msra.gmra.mxu1 %vm534_vm9, %v588_v5 }
 0x232   : > { %v728_v10 = vpop.permute.xlu1 %727 }
 0x233   : > { %v775_v32 = vadd.f32 %v774_v6, %v728_v10  ;;  %v777_v17 = vadd.f32 %v776_v29, %v728_v10 }
 0x2ef   : > { %v714_v33 = vpop.f32.mrf.mxu1 }
 0x2f0   : > { %v715_v12 = vadd.f32 %v714_v33, %v669_v11 }
 0x2f1   : > { %v716_v14 = vpop.f32.mrf.mxu1 }
 0x2f2   : > { %v781_v18 = vadd.f32 %v775_v32, %v715_v12  ;;  %v717_v19 = vadd.f32 %v716_v14, %v669_v11 }
 0x2f3   : > { %v718_v21 = vpop.f32.mrf.mxu1 }
 0x2f4   : > { %v783_v22 = vmax.f32 %v781_v18, 0.0  ;;  %v782_v24 = vadd.f32 %v777_v17, %v717_v19 }
 0x2f5   : > { %v719_v25 = vpop.f32.mrf.mxu1 }
 0x2f6   : > { %785 = vst [vmem:[%s321_s14] sm:$0xff] %v783_v22  ;;  %v784_v26 = vmax.f32 %v782_v24, 0.0 }
 0x2f8   : > { %786 = vst [vmem:[%s321_s14 + $0x8] sm:$0xff] %v784_v26 }
 0x2f9   : > { %1000 = shalt.err (!%p997_p10)
}
 0x2fa   : > { %s1001_s22 = scalar_lea.hbm %s800_s16, 256  ;;  %s1005_s25 = scalar_lea.hbm %s1557_s8, 512 }
 0x2fb   : > { %p1002_p2 = scmp.ne.s32.totalorder %s800_s16, %s1001_s22  ;;  %p1006_p7 = scmp.lt.s32.totalorder %s800_s16, %s1557_s8 }
 0x2fc   : > { %p1007_p0 = scmp.lt.s32.totalorder %s1005_s25, %s1001_s22 }
 0x2fd   : > { %p1003_p4 = pnand %p1002_p2, %p1574_p12 }
 0x2fe   : > { %p1008_p6 = por %p1007_p0, %p1006_p7 }
 0x2ff   : > { %p1004_p9 = pneg %p1003_p4 }
 0x301   : > { %p1009_p11 = pnand %p1008_p6, %p1004_p9 }
 0x303   : > { %1012 = shalt.err (!%p1009_p11)
}
 0x304   : > { %904 = dma.vmem_to_hbm [thread:$0]  (%p1574_p12), %s803_s19, 256, %s800_s16, %s788_s12  }
 0x305 PF: > { %s814_s24 = sand.u32 1, %s1039_s27   ;;  %p1575_p13 = scmp.ne.s32.totalorder %s1567_s18, 0 }
 0x306   : > { %p1576_p1 = scmp.ge.s32.totalorder %s1051_s30, 2  ;;  %s815_s26 = scalar_lea.sflag [#allocation4], %s814_s24 }
 0x308   : > { %p911_p3 = pnand %p1576_p1, %p1575_p13 }
 0x30a   : > { %p912_p5 = pneg %p911_p3 }
 0x30c   : > { %1034 = dma.done.wait (%p912_p5), %s815_s26, 256  }
 0x30d   : > { %1036 = vsyncadd (%p912_p5), %s815_s26, 4294967040  ;;  %s1577_s21 = sld [smem:[#allocation8_spill]]  ;;  %p21_p8 = scmp.ge.s32.totalorder %s1134_s11, 4  }
 0x30e   : > { %s1578_s27 = smov %s1043_s28  ;;  %s1579_s28 = smov %s1047_s29 }
 0x30f   : > { %s1581_s30 = smov %s1134_s11  ;;  %23 = sbr.rel (!%p21_p8) target bundleno = 5 (0x5), region = 105 }
 0x313   : > { %s1580_s29 = smov %s1577_s21 }
 0x314   :  { %820 = vsyncpa [#allocation3], 1 }
 0x315   :  { %822 = vsyncpa [#allocation3 + $0x1], 1 }
 0x316   :  { %823 = vsyncpa [#allocation4], 1 }
 0x317   :  { %825 = vsyncpa [#allocation4 + $0x1], 1 }

</bundles_post_ra>
